<compile_context>
chip_gen: v6e
topology: v6e:2x2x1
jax: 0.10.0
libtpu: 0.0.40
codegen_flags: <defaults>
</compile_context>

<pallas_src>
import functools

import jax
import jax.numpy as jnp
from jax.experimental import pallas as pl
from jax.experimental.pallas import tpu as pltpu

EPS = 1e-5  # nn.InstanceNorm2d default eps


def _round_up(x, m):
    return ((x + m - 1) // m) * m


# ---------------------------------------------------------------------------
# Tiled MXU matmul:  (M, K) x (K, N) -> (M, N) f32, bf16 inputs, f32 accumulator
# ---------------------------------------------------------------------------
def _matmul_kernel(a_ref, b_ref, o_ref, acc_ref):
    @pl.when(pl.program_id(2) == 0)
    def _init():
        acc_ref[...] = jnp.zeros_like(acc_ref)

    acc_ref[...] += jnp.dot(a_ref[...], b_ref[...],
                            preferred_element_type=jnp.float32)

    @pl.when(pl.program_id(2) == pl.num_programs(2) - 1)
    def _done():
        o_ref[...] = acc_ref[...]


@jax.jit
def pallas_matmul(a, b):
    """a: (M, K), b: (K, N) -> (M, N) float32.  Inputs are cast to bf16 for the MXU."""
    M, K = a.shape
    _, N = b.shape
    a = a.astype(jnp.bfloat16)
    b = b.astype(jnp.bfloat16)

    TM = min(_round_up(M, 16), 256)     # sublane axis of A / output (bf16-friendly)
    TN = min(_round_up(N, 128), 256)    # lane axis of B / output
    TK = min(_round_up(K, 128), 512)    # reduction axis

    Mp, Kp, Np = _round_up(M, TM), _round_up(K, TK), _round_up(N, TN)
    if (Mp, Kp) != (M, K):
        a = jnp.pad(a, ((0, Mp - M), (0, Kp - K)))
    if (Kp, Np) != (K, N):
        b = jnp.pad(b, ((0, Kp - K), (0, Np - N)))

    cost = pl.CostEstimate(
        flops=2 * M * N * K,
        transcendentals=0,
        bytes_accessed=(Mp * Kp + Kp * Np) * 2 + Mp * Np * 4,
    )
    out = pl.pallas_call(
        _matmul_kernel,
        out_shape=jax.ShapeDtypeStruct((Mp, Np), jnp.float32),
        grid=(Mp // TM, Np // TN, Kp // TK),
        in_specs=[pl.BlockSpec((TM, TK), lambda i, j, k: (i, k)),
                  pl.BlockSpec((TK, TN), lambda i, j, k: (k, j))],
        out_specs=pl.BlockSpec((TM, TN), lambda i, j, k: (i, j)),
        scratch_shapes=[pltpu.VMEM((TM, TN), jnp.float32)],
        compiler_params=pltpu.CompilerParams(
            dimension_semantics=("parallel", "parallel", "arbitrary")),
        cost_estimate=cost,
    )(a, b)
    return out[:M, :N]


# ---------------------------------------------------------------------------
# InstanceNorm2d(affine) + ReLU — row-tiled, gamma/beta as per-row scalars
# ---------------------------------------------------------------------------
def _in_relu_kernel(x_ref, g_ref, b_ref, o_ref):
    x = x_ref[...]                                            # (TR, H*W)
    mean = jnp.mean(x, axis=1, keepdims=True)
    var = jnp.mean(jnp.square(x - mean), axis=1, keepdims=True)  # biased var (PyTorch IN)
    xn = (x - mean) * jax.lax.rsqrt(var + EPS)
    o_ref[...] = jnp.maximum(xn * g_ref[...] + b_ref[...], 0.0)


@jax.jit
def instance_norm_relu(x, gamma, beta):
    """InstanceNorm2d(affine=True) + ReLU on channel-major x: (C, N, H, W)."""
    C, N, H, W = x.shape
    HW = H * W
    rows = C * N
    xf = x.reshape(rows, HW)
    g = jnp.repeat(gamma, N).reshape(rows, 1)
    b = jnp.repeat(beta, N).reshape(rows, 1)

    # keep each x tile <= ~2 MiB, row tile multiple of 8
    max_rows = max(8, ((2 * 1024 * 1024) // max(HW * 4, 1)) // 8 * 8)
    TR = min(_round_up(rows, 8), max_rows)
    Rp = _round_up(rows, TR)
    if Rp != rows:
        xf = jnp.pad(xf, ((0, Rp - rows), (0, 0)))
        g = jnp.pad(g, ((0, Rp - rows), (0, 0)))
        b = jnp.pad(b, ((0, Rp - rows), (0, 0)))

    out = pl.pallas_call(
        _in_relu_kernel,
        out_shape=jax.ShapeDtypeStruct((Rp, HW), jnp.float32),
        grid=(Rp // TR,),
        in_specs=[pl.BlockSpec((TR, HW), lambda i: (i, 0)),
                  pl.BlockSpec((TR, 1), lambda i: (i, 0)),
                  pl.BlockSpec((TR, 1), lambda i: (i, 0))],
        out_specs=pl.BlockSpec((TR, HW), lambda i: (i, 0)),
        compiler_params=pltpu.CompilerParams(dimension_semantics=("parallel",)),
    )(xf, g, b)
    return out[:rows].reshape(C, N, H, W)


# ---------------------------------------------------------------------------
# Variadic elementwise sum (residual / fusion adds) — row+lane tiled
# ---------------------------------------------------------------------------
def _sum_kernel(*refs):
    o_ref = refs[-1]
    acc = refs[0][...]
    for r in refs[1:-1]:
        acc = acc + r[...]
    o_ref[...] = acc


@jax.jit
def pallas_sum(*xs):
    shape = xs[0].shape
    R = shape[0]
    L = 1
    for d in shape[1:]:
        L *= d
    flats = [x.reshape(R, L).astype(jnp.float32) for x in xs]

    TR = min(_round_up(R, 8), 256)
    TL = min(_round_up(L, 128), 1024)
    Rp, Lp = _round_up(R, TR), _round_up(L, TL)
    if (Rp, Lp) != (R, L):
        flats = [jnp.pad(f, ((0, Rp - R), (0, Lp - L))) for f in flats]

    spec = pl.BlockSpec((TR, TL), lambda i, j: (i, j))
    out = pl.pallas_call(
        _sum_kernel,
        out_shape=jax.ShapeDtypeStruct((Rp, Lp), jnp.float32),
        grid=(Rp // TR, Lp // TL),
        in_specs=[spec] * len(xs),
        out_specs=spec,
        compiler_params=pltpu.CompilerParams(
            dimension_semantics=("parallel", "parallel")),
    )(*flats)
    return out[:R, :L].reshape(shape)


# ---------------------------------------------------------------------------
# Conv2d on channel-major activations: (Cin, N, H, W) -> (Cout, N, H, W)
#   stride=1, padding=dilation*(K//2), no bias.  1x1 fast path skips im2col.
# ---------------------------------------------------------------------------
@functools.partial(jax.jit, static_argnames=("dilation",))
def conv2d_cnhw(x, w, dilation=1):
    Cout, Cin, KH, KW = w.shape
    C, N, H, W = x.shape
    xb = x.astype(jnp.bfloat16)           # half HBM traffic for the im2col path
    if KH == 1 and KW == 1:
        rhs = xb.reshape(Cin, N * H * W)
        lhs = w.reshape(Cout, Cin)
    else:
        d = dilation
        ph, pw = d * (KH // 2), d * (KW // 2)
        xp = jnp.pad(xb, ((0, 0), (0, 0), (ph, ph), (pw, pw)))
        taps = [xp[:, :, kh * d:kh * d + H, kw * d:kw * d + W]
                for kh in range(KH) for kw in range(KW)]
        rhs = jnp.stack(taps, axis=0).reshape(KH * KW * Cin, N * H * W)
        lhs = w.transpose(0, 2, 3, 1).reshape(Cout, KH * KW * Cin)
    out = pallas_matmul(lhs, rhs)         # (Cout, N*H*W), lane-dense output
    return out.reshape(Cout, N, H, W)


# ---------------------------------------------------------------------------
# Layout-only glue
# ---------------------------------------------------------------------------
def nchw_to_cnhw(x):
    return jnp.transpose(x, (1, 0, 2, 3))


def cnhw_to_nchw(x):
    return jnp.transpose(x, (1, 0, 2, 3))


def pixel_reshuffle(x, r):
    N, C, H, W = x.shape
    Ho, Wo = H // r, W // r
    x = x.reshape(N, C, Ho, r, Wo, r).transpose(0, 1, 3, 5, 2, 4)
    return x.reshape(N, C * r * r, Ho, Wo)


def pixel_shuffle(x, r):
    N, C, H, W = x.shape
    Co = C // (r * r)
    x = x.reshape(N, Co, r, r, H, W).transpose(0, 1, 4, 2, 5, 3)
    return x.reshape(N, Co, H * r, W * r)


# ---------------------------------------------------------------------------
# Deterministic parameter init
# ---------------------------------------------------------------------------
_KEY = jax.random.PRNGKey(42)
_CNT = [0]


def _rand(shape, scale):
    _CNT[0] += 1
    k = jax.random.fold_in(_KEY, _CNT[0])
    return jax.random.normal(k, shape, jnp.float32) * scale


def _conv_w(shape):
    return _rand(shape, 0.02)


def _affine(c):
    return 1.0 + _rand((c,), 0.05), _rand((c,), 0.05)


def make_four_block(cin, cout, d2=1, d4=1):
    g1, b1 = _affine(cin)
    g2, b2 = _affine(cin)
    g4, b4 = _affine(cout)
    return dict(g1=g1, b1=b1, g2=g2, b2=b2, g4=g4, b4=b4,
                w1=_conv_w((cout, cin, 1, 1)),
                w2=_conv_w((cout, cin, 3, 3)),
                w4=_conv_w((cout, cout, 3, 3)),
                d2=d2, d4=d4)


def make_two_block(cin, cout):
    g1, b1 = _affine(cin)
    g2, b2 = _affine(cin)
    return dict(g1=g1, b1=b1, g2=g2, b2=b2,
                w1=_conv_w((cout, cin, 1, 1)),
                w2=_conv_w((cout, cin, 3, 3)))


def make_params():
    P = {}
    P["conv1_B"] = _conv_w((144, 16, 5, 5))
    P["conv2"] = _conv_w((64, 3, 3, 3))
    P["conv3"] = _conv_w((3, 64, 3, 3))
    P["g3"], P["b3"] = _affine(64)
    P["LocalGrad1"] = [make_four_block(144, 144) for _ in range(3)]
    P["LocalGrad2"] = [make_four_block(144, 144, d2=a, d4=b)
                       for a, b in [(1, 2), (2, 4), (4, 8)]]
    P["LocalGrad3"] = [make_four_block(144, 144, d2=a, d4=b)
                       for a, b in [(8, 4), (4, 2), (2, 1)]]
    P["LocalGrad4"] = [make_four_block(144, 144) for _ in range(3)]
    P["fuse1"] = make_two_block(144, 16)
    P["fuse2"] = make_two_block(144, 16)
    P["fuse3"] = make_two_block(144, 16)
    P["fuse4"] = make_two_block(144, 16)
    P["GlobalGrad"] = [make_four_block(64, 64)]
    return P


# ---------------------------------------------------------------------------
# Blocks (channel-major activations)
# ---------------------------------------------------------------------------
def four_conv_res_block(x, p):
    out1 = instance_norm_relu(x, p["g1"], p["b1"])
    out1 = conv2d_cnhw(out1, p["w1"])
    out2 = instance_norm_relu(x, p["g2"], p["b2"])
    out2 = conv2d_cnhw(out2, p["w2"], dilation=p["d2"])
    out2 = instance_norm_relu(out2, p["g4"], p["b4"])
    out2 = conv2d_cnhw(out2, p["w4"], dilation=p["d4"])
    return pallas_sum(x, out1, out2)


def two_conv_block(x, p):
    out1 = conv2d_cnhw(instance_norm_relu(x, p["g1"], p["b1"]), p["w1"])
    out2 = conv2d_cnhw(instance_norm_relu(x, p["g2"], p["b2"]), p["w2"])
    return pallas_sum(out1, out2)


# ---------------------------------------------------------------------------
# centerEsti forward (R/G/B branches share weights -> batched into one pass)
# ---------------------------------------------------------------------------
def center_esti_forward(blurry, P):
    N = blurry.shape[0]

    # stack the three single-channel branches along the batch axis
    b0 = jnp.concatenate(
        [pixel_reshuffle(blurry[:, c:c + 1], 4) for c in range(3)], axis=0)  # (3N,16,h,w)
    b0_c = nchw_to_cnhw(b0)                                                  # (16,3N,h,w)

    x1 = conv2d_cnhw(b0_c, P["conv1_B"])
    for blk in P["LocalGrad1"]:
        x1 = four_conv_res_block(x1, blk)
    x2 = x1
    for blk in P["LocalGrad2"]:
        x2 = four_conv_res_block(x2, blk)
    x3 = x2
    for blk in P["LocalGrad3"]:
        x3 = four_conv_res_block(x3, blk)
    x4 = x3
    for blk in P["LocalGrad4"]:
        x4 = four_conv_res_block(x4, blk)

    f1 = two_conv_block(x1, P["fuse1"])
    f2 = two_conv_block(x2, P["fuse2"])
    f3 = two_conv_block(x3, P["fuse3"])
    f4 = two_conv_block(x4, P["fuse4"])

    s = pallas_sum(f1, f2, f3, f4, b0_c)          # (16, 3N, h, w)
    up = pixel_shuffle(cnhw_to_nchw(s), 4)        # (3N, 1, H, W)
    rgb = jnp.concatenate([up[0:N], up[N:2 * N], up[2 * N:3 * N]], axis=1)  # (N,3,H,W)

    # global tail
    t = nchw_to_cnhw(rgb)                          # (3, N, H, W)
    t = conv2d_cnhw(t, P["conv2"])                 # (64, N, H, W)
    for blk in P["GlobalGrad"]:
        t = four_conv_res_block(t, blk)
    t = instance_norm_relu(t, P["g3"], P["b3"])
    t = conv2d_cnhw(t, P["conv3"])                 # (3, N, H, W)
    return pallas_sum(cnhw_to_nchw(t), blurry)     # (N, 3, H, W)


# ---------------------------------------------------------------------------
if __name__ == "__main__":
    params = make_params()
    key = jax.random.PRNGKey(0)
    # NCHW input, 3 channels, spatial divisible by 4 (pixel_reshuffle factor).
    blurry = jax.random.normal(key, (2, 3, 8, 8), jnp.float32)
    out = center_esti_forward(blurry, params)
    out = jax.block_until_ready(out)
    assert out.shape == (2, 3, 8, 8), out.shape
    assert bool(jnp.all(jnp.isfinite(out)))
    print("KERNEL_OK")
</pallas_src>

<mosaic_0001>
module attributes {stable_mosaic.version = 11 : i64} {
  func.func @_matmul_kernel(%arg0: i32, %arg1: i32, %arg2: i32, %arg3: memref<144x512xbf16, #tpu.memory_space<vmem>>, %arg4: memref<512x128xbf16, #tpu.memory_space<vmem>>, %arg5: memref<144x128xf32, #tpu.memory_space<vmem>>, %arg6: memref<144x128xf32, #tpu.memory_space<vmem>>) attributes {dimension_semantics = [#tpu.dimension_semantics<parallel>, #tpu.dimension_semantics<parallel>, #tpu.dimension_semantics<arbitrary>], iteration_bounds = array<i64: 1, 1, 1>, scalar_prefetch = 0 : i64, scratch_operands = 1 : i64, tpu.core_type = #tpu.core_type<tc>, window_params = [{transform_indices = @transform_0, window_bounds = array<i64: 144, 512>}, {transform_indices = @transform_1, window_bounds = array<i64: 512, 128>}, {transform_indices = @transform_2, window_bounds = array<i64: 144, 128>}]} {
    %c0_i32 = arith.constant 0 : i32
    %0 = arith.cmpi eq, %arg2, %c0_i32 : i32
    %1 = arith.extui %0 : i1 to i32
    %c0_i32_0 = arith.constant 0 : i32
    %2 = arith.cmpi ne, %1, %c0_i32_0 : i32
    scf.if %2 {
      %cst_10 = arith.constant 0.000000e+00 : f32
      %12 = vector.broadcast %cst_10 : f32 to vector<144x128xf32>
      %c0_11 = arith.constant 0 : index
      %c0_12 = arith.constant 0 : index
      %13 = vector.load %arg6[%c0_11, %c0_12] : memref<144x128xf32, #tpu.memory_space<vmem>>, vector<144x128xf32>
      tpu.vector_store %arg6[%c0_11, %c0_12], %12 {strides = array<i32>} : memref<144x128xf32, #tpu.memory_space<vmem>>, vector<144x128xf32>,
    } else {
    }
    %c0 = arith.constant 0 : index
    %c0_1 = arith.constant 0 : index
    %3 = vector.load %arg6[%c0, %c0_1] : memref<144x128xf32, #tpu.memory_space<vmem>>, vector<144x128xf32>
    %c0_2 = arith.constant 0 : index
    %c0_3 = arith.constant 0 : index
    %4 = vector.load %arg3[%c0_2, %c0_3] : memref<144x512xbf16, #tpu.memory_space<vmem>>, vector<144x512xbf16>
    %c0_4 = arith.constant 0 : index
    %c0_5 = arith.constant 0 : index
    %5 = vector.load %arg4[%c0_4, %c0_5] : memref<512x128xbf16, #tpu.memory_space<vmem>>, vector<512x128xbf16>
    %cst = arith.constant dense<0.000000e+00> : vector<144x128xf32>
    %6 = tpu.matmul %4, %5, %cst {dimension_numbers = #tpu.dot_dimension_numbers<[1], [0], [0], [1], [0, 0, 1, 1], [], []>} : vector<144x512xbf16>, vector<512x128xbf16>, vector<144x128xf32> -> vector<144x128xf32>
    %7 = arith.addf %3, %6 : vector<144x128xf32>
    %c0_6 = arith.constant 0 : index
    %c0_7 = arith.constant 0 : index
    %8 = vector.load %arg6[%c0_6, %c0_7] : memref<144x128xf32, #tpu.memory_space<vmem>>, vector<144x128xf32>
    tpu.vector_store %arg6[%c0_6, %c0_7], %7 {strides = array<i32>} : memref<144x128xf32, #tpu.memory_space<vmem>>, vector<144x128xf32>,
    %c0_i32_8 = arith.constant 0 : i32
    %9 = arith.cmpi eq, %arg2, %c0_i32_8 : i32
    %10 = arith.extui %9 : i1 to i32
    %c0_i32_9 = arith.constant 0 : i32
    %11 = arith.cmpi ne, %10, %c0_i32_9 : i32
    scf.if %11 {
      %c0_10 = arith.constant 0 : index
      %c0_11 = arith.constant 0 : index
      %12 = vector.load %arg6[%c0_10, %c0_11] : memref<144x128xf32, #tpu.memory_space<vmem>>, vector<144x128xf32>
      %c0_12 = arith.constant 0 : index
      %c0_13 = arith.constant 0 : index
      %13 = vector.load %arg5[%c0_12, %c0_13] : memref<144x128xf32, #tpu.memory_space<vmem>>, vector<144x128xf32>
      tpu.vector_store %arg5[%c0_12, %c0_13], %12 {strides = array<i32>} : memref<144x128xf32, #tpu.memory_space<vmem>>, vector<144x128xf32>,
    } else {
    }
    return
  }
  func.func @transform_0(%arg0: i32, %arg1: i32, %arg2: i32) -> (i32, i32) {
    %c0_i32 = arith.constant 0 : i32
    return %arg0, %arg2 : i32, i32
  }
  func.func @transform_1(%arg0: i32, %arg1: i32, %arg2: i32) -> (i32, i32) {
    %c0_i32 = arith.constant 0 : i32
    return %arg2, %arg1 : i32, i32
  }
  func.func @transform_2(%arg0: i32, %arg1: i32, %arg2: i32) -> (i32, i32) {
    %c0_i32 = arith.constant 0 : i32
    return %arg0, %arg1 : i32, i32
  }
}

</mosaic_0001>

<bundles_post_ra>
// kernel: pallas_matmul.1
= control target key start
LH: loop header
LB: loop body
LE: loop exit
PB: predicated region body
PF: predicated region fallthrough
CT: control target
= control target key end

     0   :  { %s1380_s1 = inlined_call_operand.vmem [shape: bf16[512,128], index: 1, kind: input, shape index: {}]   ;;  %s1381_s0 = inlined_call_operand.vmem [shape: bf16[144,512], index: 0, kind: input, shape index: {}]   ;;  %s1382_s2 = inlined_call_operand.vmem [shape: f32[144,128], index: 2, kind: output, shape index: {}]  }
   0x1   :  { %v1021_v0 = vld [vmem:[%s1380_s1 + $0x78] sm:$0xff]   ;;  %v1025_v4 = vld [vmem:[%s1380_s1 + $0x70] sm:$0xff]   ;;  %v1029_v8 = vld [vmem:[%s1380_s1 + $0x68] sm:$0xff]  }
   0x2   :  { %v1022_v1 = vld [vmem:[%s1380_s1 + $0xf8] sm:$0xff]   ;;  %881 = vmatprep.subr.bf16.mxu0 %v1021_v0  ;;  %v1026_v5 = vld [vmem:[%s1380_s1 + $0xf0] sm:$0xff]   ;;  %v1030_v9 = vld [vmem:[%s1380_s1 + $0xe8] sm:$0xff]  }
   0x3   :  { %v1023_v2 = vld [vmem:[%s1380_s1 + $0x38] sm:$0xff]   ;;  %951 = vmatprep.subr.bf16.mxu1 %v1022_v1  ;;  %v1027_v6 = vld [vmem:[%s1380_s1 + $0x30] sm:$0xff]   ;;  %v1031_v10 = vld [vmem:[%s1380_s1 + $0x28] sm:$0xff]  }
   0x4   :  { %v1024_v3 = vld [vmem:[%s1380_s1 + $0xb8] sm:$0xff]   ;;  %882 = vmatpush3.bf16.msra.mxu0 %v1023_v2  ;;  %v1028_v7 = vld [vmem:[%s1380_s1 + $0xb0] sm:$0xff]   ;;  %v1032_v11 = vld [vmem:[%s1380_s1 + $0xa8] sm:$0xff]  }
   0x5   :  { %952 = vmatpush3.bf16.msra.mxu1 %v1024_v3  ;;  %883 = vmatprep.subr.bf16.mxu0 %v1025_v4  ;;  %v1033_v12 = vld [vmem:[%s1380_s1 + $0x60] sm:$0xff]   ;;  %v1037_v16 = vld [vmem:[%s1380_s1 + $0x58] sm:$0xff]   ;;  %v1041_v20 = vld [vmem:[%s1380_s1 + $0x50] sm:$0xff]  }
   0x6   :  { %953 = vmatprep.subr.bf16.mxu1 %v1026_v5  ;;  %v1034_v13 = vld [vmem:[%s1380_s1 + $0xe0] sm:$0xff]   ;;  %v1038_v17 = vld [vmem:[%s1380_s1 + $0xd8] sm:$0xff]   ;;  %v1042_v21 = vld [vmem:[%s1380_s1 + $0xd0] sm:$0xff]  }
   0x7   :  { %v1035_v14 = vld [vmem:[%s1380_s1 + $0x20] sm:$0xff]   ;;  %v1039_v18 = vld [vmem:[%s1380_s1 + $0x18] sm:$0xff]   ;;  %v1043_v22 = vld [vmem:[%s1380_s1 + $0x10] sm:$0xff]  }
   0x8   :  { %884 = vmatpush3.bf16.msra.mxu0 %v1027_v6  ;;  %v1036_v15 = vld [vmem:[%s1380_s1 + $0xa0] sm:$0xff]   ;;  %v1040_v19 = vld [vmem:[%s1380_s1 + $0x98] sm:$0xff]   ;;  %v1044_v23 = vld [vmem:[%s1380_s1 + $0x90] sm:$0xff]  }
   0x9   :  { %954 = vmatpush3.bf16.msra.mxu1 %v1028_v7  ;;  %885 = vmatprep.subr.bf16.mxu0 %v1029_v8  ;;  %v1045_v24 = vld [vmem:[%s1380_s1 + $0x48] sm:$0xff]   ;;  %v1049_v28 = vld [vmem:[%s1380_s1 + $0x40] sm:$0xff]  }
   0xa   :  { %955 = vmatprep.subr.bf16.mxu1 %v1030_v9  ;;  %v1046_v25 = vld [vmem:[%s1380_s1 + $0xc8] sm:$0xff]   ;;  %v1050_v29 = vld [vmem:[%s1380_s1 + $0xc0] sm:$0xff]  }
   0xb   :  { %v1047_v26 = vld [vmem:[%s1380_s1 + $0x8] sm:$0xff]   ;;  %v1051_v30 = vld [vmem:[%s1380_s1] sm:$0xff]  }
   0xc   :  { %886 = vmatpush3.bf16.msra.mxu0 %v1031_v10  ;;  %v1048_v27 = vld [vmem:[%s1380_s1 + $0x88] sm:$0xff]   ;;  %v1052_v31 = vld [vmem:[%s1380_s1 + $0x80] sm:$0xff]  }
   0xd   :  { %956 = vmatpush3.bf16.msra.mxu1 %v1032_v11  ;;  %887 = vmatprep.subr.bf16.mxu0 %v1033_v12  ;;  %v1053_v32 = vld [vmem:[%s1381_s0] ss:$16 sps:$4 sm:$0xff]   ;;  %v1055_v33 = vld [vmem:[%s1381_s0 + $0x4] ss:$16 sps:$4 sm:$0xff]   ;;  %v1056_v34 = vld [vmem:[%s1381_s0 + $0x8] ss:$16 sps:$4 sm:$0xff]  }
   0xe   :  { %957 = vmatprep.subr.bf16.mxu1 %v1034_v13  ;;  %v1058_v35 = vld [vmem:[%s1381_s0 + $0xc] ss:$16 sps:$4 sm:$0xff]   ;;  %556 = vmatprep.mubr.bf16.mxu0 %v1055_v33  ;;  %v1059_v36 = vld [vmem:[%s1381_s0 + $0x24] ss:$16 sps:$4 sm:$0xff]   ;;  %v1063_v38 = vld [vmem:[%s1381_s0 + $0x20] ss:$16 sps:$4 sm:$0xff]  }
   0xf   :  { %661 = vmatprep.mubr.bf16.mxu1 %v1058_v35  ;;  %v1061_v37 = vld [vmem:[%s1381_s0 + $0x2c] ss:$16 sps:$4 sm:$0xff]   ;;  %v1064_v39 = vld [vmem:[%s1381_s0 + $0x28] ss:$16 sps:$4 sm:$0xff]   ;;  %v1065_v40 = vld [vmem:[%s1381_s0 + $0x44] ss:$16 sps:$4 sm:$0xff]  }
  0x10   :  { %888 = vmatpush3.bf16.msra.mxu0 %v1035_v14  ;;  %v1067_v41 = vld [vmem:[%s1381_s0 + $0x4c] ss:$16 sps:$4 sm:$0xff]   ;;  %v1069_v42 = vld [vmem:[%s1381_s0 + $0x40] ss:$16 sps:$4 sm:$0xff]   ;;  %v1070_v43 = vld [vmem:[%s1381_s0 + $0x48] ss:$16 sps:$4 sm:$0xff]  }
  0x11   :  { %958 = vmatpush3.bf16.msra.mxu1 %v1036_v15  ;;  %889 = vmatprep.subr.bf16.mxu0 %v1037_v16  ;;  %v1071_v44 = vld [vmem:[%s1381_s0 + $0x64] ss:$16 sps:$4 sm:$0xff]   ;;  %v1073_v45 = vld [vmem:[%s1381_s0 + $0x6c] ss:$16 sps:$4 sm:$0xff]   ;;  %v1075_v46 = vld [vmem:[%s1381_s0 + $0x60] ss:$16 sps:$4 sm:$0xff]  }
  0x12   :  { %959 = vmatprep.subr.bf16.mxu1 %v1038_v17  ;;  %v1076_v47 = vld [vmem:[%s1381_s0 + $0x68] ss:$16 sps:$4 sm:$0xff]   ;;  %v1077_v48 = vld [vmem:[%s1381_s0 + $0x84] ss:$16 sps:$4 sm:$0xff]   ;;  %v1079_v49 = vld [vmem:[%s1381_s0 + $0x8c] ss:$16 sps:$4 sm:$0xff]  }
  0x13   :  { %v1081_v50 = vld [vmem:[%s1381_s0 + $0x80] ss:$16 sps:$4 sm:$0xff]   ;;  %v1082_v51 = vld [vmem:[%s1381_s0 + $0x88] ss:$16 sps:$4 sm:$0xff]   ;;  %v1083_v52 = vld [vmem:[%s1381_s0 + $0xa4] ss:$16 sps:$4 sm:$0xff]  }
  0x14   :  { %890 = vmatpush3.bf16.msra.mxu0 %v1039_v18  ;;  %v1085_v53 = vld [vmem:[%s1381_s0 + $0xac] ss:$16 sps:$4 sm:$0xff]   ;;  %v1087_v54 = vld [vmem:[%s1381_s0 + $0xa0] ss:$16 sps:$4 sm:$0xff]   ;;  %v1088_v55 = vld [vmem:[%s1381_s0 + $0xa8] ss:$16 sps:$4 sm:$0xff]  }
  0x15   :  { %960 = vmatpush3.bf16.msra.mxu1 %v1040_v19  ;;  %891 = vmatprep.subr.bf16.mxu0 %v1041_v20  ;;  %v1089_v56 = vld [vmem:[%s1381_s0 + $0xc4] ss:$16 sps:$4 sm:$0xff]   ;;  %v1091_v57 = vld [vmem:[%s1381_s0 + $0xcc] ss:$16 sps:$4 sm:$0xff]   ;;  %v1093_v58 = vld [vmem:[%s1381_s0 + $0xc0] ss:$16 sps:$4 sm:$0xff]  }
  0x16   :  { %961 = vmatprep.subr.bf16.mxu1 %v1042_v21  ;;  %v1094_v59 = vld [vmem:[%s1381_s0 + $0xc8] ss:$16 sps:$4 sm:$0xff]   ;;  %v1095_v60 = vld [vmem:[%s1381_s0 + $0xe4] ss:$16 sps:$4 sm:$0xff]   ;;  %v1097_v61 = vld [vmem:[%s1381_s0 + $0xec] ss:$16 sps:$4 sm:$0xff]  }
  0x17   :  { %v1099_v62 = vld [vmem:[%s1381_s0 + $0xe0] ss:$16 sps:$4 sm:$0xff]   ;;  %v1100_v63 = vld [vmem:[%s1381_s0 + $0xe8] ss:$16 sps:$4 sm:$0xff]   ;;  %v1101_v0 = vld [vmem:[%s1381_s0 + $0x104] ss:$16 sps:$4 sm:$0xff]  }
  0x18   :  { %892 = vmatpush3.bf16.msra.mxu0 %v1043_v22  ;;  %v1103_v1 = vld [vmem:[%s1381_s0 + $0x10c] ss:$16 sps:$4 sm:$0xff]   ;;  %v1105_v2 = vld [vmem:[%s1381_s0 + $0x100] ss:$16 sps:$4 sm:$0xff]   ;;  %v1106_v3 = vld [vmem:[%s1381_s0 + $0x108] ss:$16 sps:$4 sm:$0xff]  }
  0x19   :  { %962 = vmatpush3.bf16.msra.mxu1 %v1044_v23  ;;  %893 = vmatprep.subr.bf16.mxu0 %v1045_v24 }
  0x1a   :  { %963 = vmatprep.subr.bf16.mxu1 %v1046_v25 }
  0x1c   :  { %894 = vmatpush3.bf16.msra.mxu0 %v1047_v26 }
  0x1d   :  { %964 = vmatpush3.bf16.msra.mxu1 %v1048_v27  ;;  %895 = vmatprep.subr.bf16.mxu0 %v1049_v28 }
  0x1e   :  { %965 = vmatprep.subr.bf16.mxu1 %v1050_v29 }
  0x20   :  { %896 = vmatpush3.bf16.msra.mxu0 %v1051_v30 }
  0x21   :  { %966 = vmatpush3.bf16.msra.mxu1 %v1052_v31 }
  0x23   :  { %557 = vmatmul.mubr.bf16.vlgmr.msra.gmra.mxu0 %v1053_v32 }
  0x24   :  { %662 = vmatmul.mubr.bf16.vlgmr.msra.gmra.mxu1 %v1056_v34  ;;  %564 = vmatprep.mubr.bf16.mxu0 %v1059_v36 }
  0x25   :  { %669 = vmatprep.mubr.bf16.mxu1 %v1061_v37 }
  0x2b   :  { %565 = vmatmul.mubr.bf16.gmra.mxu0 %v1063_v38 }
  0x2c   :  { %670 = vmatmul.mubr.bf16.gmra.mxu1 %v1064_v39  ;;  %572 = vmatprep.mubr.bf16.mxu0 %v1065_v40 }
  0x2d   :  { %677 = vmatprep.mubr.bf16.mxu1 %v1067_v41 }
  0x33   :  { %573 = vmatmul.mubr.bf16.gmra.mxu0 %v1069_v42 }
  0x34   :  { %678 = vmatmul.mubr.bf16.gmra.mxu1 %v1070_v43  ;;  %580 = vmatprep.mubr.bf16.mxu0 %v1071_v44 }
  0x35   :  { %685 = vmatprep.mubr.bf16.mxu1 %v1073_v45 }
  0x3b   :  { %581 = vmatmul.mubr.bf16.gmra.mxu0 %v1075_v46 }
  0x3c   :  { %686 = vmatmul.mubr.bf16.gmra.mxu1 %v1076_v47  ;;  %588 = vmatprep.mubr.bf16.mxu0 %v1077_v48 }
  0x3d   :  { %693 = vmatprep.mubr.bf16.mxu1 %v1079_v49 }
  0x43   :  { %589 = vmatmul.mubr.bf16.gmra.mxu0 %v1081_v50 }
  0x44   :  { %694 = vmatmul.mubr.bf16.gmra.mxu1 %v1082_v51  ;;  %596 = vmatprep.mubr.bf16.mxu0 %v1083_v52 }
  0x45   :  { %701 = vmatprep.mubr.bf16.mxu1 %v1085_v53 }
  0x4b   :  { %597 = vmatmul.mubr.bf16.gmra.mxu0 %v1087_v54 }
  0x4c   :  { %702 = vmatmul.mubr.bf16.gmra.mxu1 %v1088_v55  ;;  %604 = vmatprep.mubr.bf16.mxu0 %v1089_v56 }
  0x4d   :  { %709 = vmatprep.mubr.bf16.mxu1 %v1091_v57 }
  0x53   :  { %605 = vmatmul.mubr.bf16.gmra.mxu0 %v1093_v58 }
  0x54   :  { %710 = vmatmul.mubr.bf16.gmra.mxu1 %v1094_v59  ;;  %612 = vmatprep.mubr.bf16.mxu0 %v1095_v60 }
  0x55   :  { %717 = vmatprep.mubr.bf16.mxu1 %v1097_v61 }
  0x5b   :  { %613 = vmatmul.mubr.bf16.gmra.mxu0 %v1099_v62 }
  0x5c   :  { %718 = vmatmul.mubr.bf16.gmra.mxu1 %v1100_v63  ;;  %620 = vmatprep.mubr.bf16.mxu0 %v1101_v0 }
  0x5d   :  { %725 = vmatprep.mubr.bf16.mxu1 %v1103_v1 }
  0x63   :  { %621 = vmatmul.mubr.bf16.gmra.mxu0 %v1105_v2 }
  0x64   :  { %726 = vmatmul.mubr.bf16.gmra.mxu1 %v1106_v3 }
  0xe3   :  { %v897_v4 = vpop.f32.mrf.mxu0 }
  0xe4   :  { %v967_v5 = vpop.f32.mrf.mxu1 }
  0xe5   :  { %v898_v6 = vpop.f32.mrf.mxu0 }
  0xe6   :  { %v899_v7 = vadd.f32 %v898_v6, %v897_v4  ;;  %v968_v8 = vpop.f32.mrf.mxu1 }
  0xe7   :  { %v969_v9 = vadd.f32 %v968_v8, %v967_v5  ;;  %v900_v10 = vpop.f32.mrf.mxu0 }
  0xe8   :  { %v970_v11 = vpop.f32.mrf.mxu1 }
  0xe9   :  { %v664_v12 = vadd.f32 %v969_v9, %v899_v7  ;;  %v901_v13 = vpop.f32.mrf.mxu0 }
  0xea   :  { %v902_v14 = vadd.f32 %v901_v13, %v900_v10  ;;  %v971_v15 = vpop.f32.mrf.mxu1 }
  0xeb   :  { %791 = vst [vmem:[%s1382_s2] sm:$0xff] %v664_v12  ;;  %v972_v16 = vadd.f32 %v971_v15, %v970_v11  ;;  %v903_v17 = vpop.f32.mrf.mxu0 }
  0xec   :  { %v973_v18 = vpop.f32.mrf.mxu1 }
  0xed   :  { %v667_v19 = vadd.f32 %v972_v16, %v902_v14  ;;  %v904_v20 = vpop.f32.mrf.mxu0 }
  0xee   :  { %v905_v21 = vadd.f32 %v904_v20, %v903_v17  ;;  %v974_v22 = vpop.f32.mrf.mxu1 }
  0xef   :  { %792 = vst [vmem:[%s1382_s2 + $0x8] sm:$0xff] %v667_v19  ;;  %v975_v23 = vadd.f32 %v974_v22, %v973_v18  ;;  %v906_v24 = vpop.f32.mrf.mxu0 }
  0xf0   :  { %v976_v25 = vpop.f32.mrf.mxu1 }
  0xf1   :  { %v672_v26 = vadd.f32 %v975_v23, %v905_v21  ;;  %v907_v27 = vpop.f32.mrf.mxu0 }
  0xf2   :  { %v908_v28 = vadd.f32 %v907_v27, %v906_v24  ;;  %v977_v29 = vpop.f32.mrf.mxu1 }
  0xf3   :  { %793 = vst [vmem:[%s1382_s2 + $0x10] sm:$0xff] %v672_v26  ;;  %v978_v30 = vadd.f32 %v977_v29, %v976_v25  ;;  %v909_v31 = vpop.f32.mrf.mxu0 }
  0xf4   :  { %v979_v32 = vpop.f32.mrf.mxu1 }
  0xf5   :  { %v675_v33 = vadd.f32 %v978_v30, %v908_v28  ;;  %v910_v34 = vpop.f32.mrf.mxu0 }
  0xf6   :  { %v911_v35 = vadd.f32 %v910_v34, %v909_v31  ;;  %v980_v36 = vpop.f32.mrf.mxu1 }
  0xf7   :  { %794 = vst [vmem:[%s1382_s2 + $0x18] sm:$0xff] %v675_v33  ;;  %v981_v37 = vadd.f32 %v980_v36, %v979_v32  ;;  %v912_v38 = vpop.f32.mrf.mxu0 }
  0xf8   :  { %v982_v39 = vpop.f32.mrf.mxu1 }
  0xf9   :  { %v680_v40 = vadd.f32 %v981_v37, %v911_v35  ;;  %v913_v41 = vpop.f32.mrf.mxu0 }
  0xfa   :  { %v914_v42 = vadd.f32 %v913_v41, %v912_v38  ;;  %v983_v43 = vpop.f32.mrf.mxu1 }
  0xfb   :  { %795 = vst [vmem:[%s1382_s2 + $0x20] sm:$0xff] %v680_v40  ;;  %v984_v44 = vadd.f32 %v983_v43, %v982_v39  ;;  %v915_v45 = vpop.f32.mrf.mxu0 }
  0xfc   :  { %v985_v46 = vpop.f32.mrf.mxu1 }
  0xfd   :  { %v683_v47 = vadd.f32 %v984_v44, %v914_v42  ;;  %v916_v48 = vpop.f32.mrf.mxu0 }
  0xfe   :  { %v917_v49 = vadd.f32 %v916_v48, %v915_v45  ;;  %v986_v50 = vpop.f32.mrf.mxu1 }
  0xff   :  { %796 = vst [vmem:[%s1382_s2 + $0x28] sm:$0xff] %v683_v47  ;;  %v987_v51 = vadd.f32 %v986_v50, %v985_v46  ;;  %v918_v52 = vpop.f32.mrf.mxu0 }
 0x100   :  { %v988_v53 = vpop.f32.mrf.mxu1 }
 0x101   :  { %v688_v54 = vadd.f32 %v987_v51, %v917_v49  ;;  %v919_v55 = vpop.f32.mrf.mxu0 }
 0x102   :  { %v920_v56 = vadd.f32 %v919_v55, %v918_v52  ;;  %v989_v57 = vpop.f32.mrf.mxu1 }
 0x103   :  { %797 = vst [vmem:[%s1382_s2 + $0x30] sm:$0xff] %v688_v54  ;;  %v990_v58 = vadd.f32 %v989_v57, %v988_v53  ;;  %v921_v59 = vpop.f32.mrf.mxu0 }
 0x104   :  { %v991_v60 = vpop.f32.mrf.mxu1 }
 0x105   :  { %v691_v61 = vadd.f32 %v990_v58, %v920_v56  ;;  %v922_v62 = vpop.f32.mrf.mxu0 }
 0x106   :  { %v923_v63 = vadd.f32 %v922_v62, %v921_v59  ;;  %v992_v0 = vpop.f32.mrf.mxu1 }
 0x107   :  { %798 = vst [vmem:[%s1382_s2 + $0x38] sm:$0xff] %v691_v61  ;;  %v993_v1 = vadd.f32 %v992_v0, %v991_v60  ;;  %v924_v2 = vpop.f32.mrf.mxu0 }
 0x108   :  { %v994_v3 = vpop.f32.mrf.mxu1 }
 0x109   :  { %v696_v4 = vadd.f32 %v993_v1, %v923_v63  ;;  %v925_v5 = vpop.f32.mrf.mxu0 }
 0x10a   :  { %v926_v6 = vadd.f32 %v925_v5, %v924_v2  ;;  %v995_v7 = vpop.f32.mrf.mxu1 }
 0x10b   :  { %799 = vst [vmem:[%s1382_s2 + $0x40] sm:$0xff] %v696_v4  ;;  %v996_v8 = vadd.f32 %v995_v7, %v994_v3  ;;  %v927_v9 = vpop.f32.mrf.mxu0 }
 0x10c   :  { %v997_v10 = vpop.f32.mrf.mxu1 }
 0x10d   :  { %v699_v11 = vadd.f32 %v996_v8, %v926_v6  ;;  %v928_v12 = vpop.f32.mrf.mxu0 }
 0x10e   :  { %v929_v13 = vadd.f32 %v928_v12, %v927_v9  ;;  %v998_v14 = vpop.f32.mrf.mxu1 }
 0x10f   :  { %800 = vst [vmem:[%s1382_s2 + $0x48] sm:$0xff] %v699_v11  ;;  %v999_v15 = vadd.f32 %v998_v14, %v997_v10  ;;  %v930_v16 = vpop.f32.mrf.mxu0 }
 0x110   :  { %v1000_v17 = vpop.f32.mrf.mxu1 }
 0x111   :  { %v704_v18 = vadd.f32 %v999_v15, %v929_v13  ;;  %v931_v19 = vpop.f32.mrf.mxu0 }
 0x112   :  { %v932_v20 = vadd.f32 %v931_v19, %v930_v16  ;;  %v1001_v21 = vpop.f32.mrf.mxu1 }
 0x113   :  { %801 = vst [vmem:[%s1382_s2 + $0x50] sm:$0xff] %v704_v18  ;;  %v1002_v22 = vadd.f32 %v1001_v21, %v1000_v17  ;;  %v933_v23 = vpop.f32.mrf.mxu0 }
 0x114   :  { %v1003_v24 = vpop.f32.mrf.mxu1 }
 0x115   :  { %v707_v25 = vadd.f32 %v1002_v22, %v932_v20  ;;  %v934_v26 = vpop.f32.mrf.mxu0 }
 0x116   :  { %v935_v27 = vadd.f32 %v934_v26, %v933_v23  ;;  %v1004_v28 = vpop.f32.mrf.mxu1 }
 0x117   :  { %802 = vst [vmem:[%s1382_s2 + $0x58] sm:$0xff] %v707_v25  ;;  %v1005_v29 = vadd.f32 %v1004_v28, %v1003_v24  ;;  %v936_v30 = vpop.f32.mrf.mxu0 }
 0x118   :  { %v1006_v31 = vpop.f32.mrf.mxu1 }
 0x119   :  { %v712_v32 = vadd.f32 %v1005_v29, %v935_v27  ;;  %v937_v33 = vpop.f32.mrf.mxu0 }
 0x11a   :  { %v938_v34 = vadd.f32 %v937_v33, %v936_v30  ;;  %v1007_v35 = vpop.f32.mrf.mxu1 }
 0x11b   :  { %803 = vst [vmem:[%s1382_s2 + $0x60] sm:$0xff] %v712_v32  ;;  %v1008_v36 = vadd.f32 %v1007_v35, %v1006_v31  ;;  %v939_v37 = vpop.f32.mrf.mxu0 }
 0x11c   :  { %v1009_v38 = vpop.f32.mrf.mxu1 }
 0x11d   :  { %v715_v39 = vadd.f32 %v1008_v36, %v938_v34  ;;  %v940_v40 = vpop.f32.mrf.mxu0 }
 0x11e   :  { %v941_v41 = vadd.f32 %v940_v40, %v939_v37  ;;  %v1010_v42 = vpop.f32.mrf.mxu1 }
 0x11f   :  { %804 = vst [vmem:[%s1382_s2 + $0x68] sm:$0xff] %v715_v39  ;;  %v1011_v43 = vadd.f32 %v1010_v42, %v1009_v38  ;;  %v942_v44 = vpop.f32.mrf.mxu0 }
 0x120   :  { %v1012_v45 = vpop.f32.mrf.mxu1 }
 0x121   :  { %v720_v46 = vadd.f32 %v1011_v43, %v941_v41  ;;  %v943_v47 = vpop.f32.mrf.mxu0 }
 0x122   :  { %v944_v48 = vadd.f32 %v943_v47, %v942_v44  ;;  %v1013_v49 = vpop.f32.mrf.mxu1 }
 0x123   :  { %805 = vst [vmem:[%s1382_s2 + $0x70] sm:$0xff] %v720_v46  ;;  %v1014_v50 = vadd.f32 %v1013_v49, %v1012_v45  ;;  %v945_v51 = vpop.f32.mrf.mxu0 }
 0x124   :  { %v1015_v52 = vpop.f32.mrf.mxu1 }
 0x125   :  { %v723_v53 = vadd.f32 %v1014_v50, %v944_v48  ;;  %v946_v54 = vpop.f32.mrf.mxu0 }
 0x126   :  { %v947_v55 = vadd.f32 %v946_v54, %v945_v51  ;;  %v1016_v56 = vpop.f32.mrf.mxu1 }
 0x127   :  { %806 = vst [vmem:[%s1382_s2 + $0x78] sm:$0xff] %v723_v53  ;;  %v1017_v57 = vadd.f32 %v1016_v56, %v1015_v52  ;;  %v948_v58 = vpop.f32.mrf.mxu0 }
 0x128   :  { %v1018_v59 = vpop.f32.mrf.mxu1 }
 0x129   :  { %v728_v60 = vadd.f32 %v1017_v57, %v947_v55  ;;  %v949_v61 = vpop.f32.mrf.mxu0 }
 0x12a   :  { %v950_v62 = vadd.f32 %v949_v61, %v948_v58  ;;  %v1019_v63 = vpop.f32.mrf.mxu1 }
 0x12b   :  { %807 = vst [vmem:[%s1382_s2 + $0x80] sm:$0xff] %v728_v60  ;;  %v1020_v0 = vadd.f32 %v1019_v63, %v1018_v59 }
 0x12d   :  { %v731_v1 = vadd.f32 %v1020_v0, %v950_v62 }
 0x12f   :  { %808 = vst [vmem:[%s1382_s2 + $0x88] sm:$0xff] %v731_v1 }

</bundles_post_ra>
